<compile_context>
chip_gen: v7x
topology: tpu7x:2x2x1
jax: 0.10.0
libtpu: 0.0.40
codegen_flags: <defaults>
</compile_context>

<pallas_src>
import functools
import math

import jax
import jax.numpy as jnp
from jax.experimental import pallas as pl
from jax.experimental.pallas import tpu as pltpu


# --------------------------------- kernels -----------------------------------
def _pe_eval_kernel(x_ref, pos_ref, o_ref):
    # out = x + pos   (dropout p=0 / eval mode -> identity)
    o_ref[...] = x_ref[...] + pos_ref[...]


def _pe_train_kernel(seed_ref, x_ref, pos_ref, o_ref, *, p):
    # out = inverted-dropout(x + pos) using the on-chip PRNG.
    y = x_ref[...] + pos_ref[...]
    pltpu.prng_seed(seed_ref[0] + pl.program_id(0))          # per-tile stream
    bits = pltpu.bitcast(pltpu.prng_random_bits(y.shape), jnp.uint32)
    u = (bits >> 8).astype(jnp.float32) * (1.0 / (1 << 24))  # uniform [0, 1)
    keep = u >= jnp.float32(p)
    o_ref[...] = jnp.where(keep, y * (1.0 / (1.0 - p)),
                           jnp.zeros_like(y)).astype(o_ref.dtype)


# --------------------------------- wrapper ------------------------------------
def positional_encoding_forward(x, pos_features, *, p=0.0, training=False, seed=0):
    """x: (B, S, E) float; pos_features: (max_len, E). Returns dropout(x + pe[:S])."""
    B, S, E = x.shape
    assert S <= pos_features.shape[0], "sequence longer than max_len"
    N = S * E

    # Lane-dense 2-D slabs: last dim S*E (multiple of 128 for S=8, E=32).
    x2 = x.reshape(B, N)
    pos2 = pos_features[:S].astype(x.dtype).reshape(1, N)

    # Batch tiling: one block if it comfortably fits VMEM, else 8-row tiles
    # (8 keeps the sublane dim of the block (8,128)-aligned).
    budget = 4 << 20                                   # 4 MiB per buffer
    if B * N * x2.dtype.itemsize <= budget or B % 8 != 0:
        bb = B
    else:
        bb = 8
    grid = (B // bb,)

    x_spec = pl.BlockSpec((bb, N), lambda i: (i, 0))
    pos_spec = pl.BlockSpec((1, N), lambda i: (0, 0))   # replicated across tiles
    out_spec = pl.BlockSpec((bb, N), lambda i: (i, 0))

    if training and p > 0.0:
        kernel = functools.partial(_pe_train_kernel, p=float(p))
        in_specs = [pl.BlockSpec(memory_space=pltpu.MemorySpace.SMEM),
                    x_spec, pos_spec]
        args = (jnp.asarray([seed], dtype=jnp.int32), x2, pos2)
    else:
        kernel = _pe_eval_kernel
        in_specs = [x_spec, pos_spec]
        args = (x2, pos2)

    out2 = pl.pallas_call(
        kernel,
        grid=grid,
        in_specs=in_specs,
        out_specs=out_spec,
        out_shape=jax.ShapeDtypeStruct((B, N), x.dtype),
        compiler_params=pltpu.CompilerParams(
            dimension_semantics=("parallel",)),
    )(*args)
    return out2.reshape(B, S, E)


# ---------------------- module __init__ equivalent (buffer) -------------------
def make_positional_features(max_len, embedding_size):
    """Sinusoidal table identical to PositionalEncoding.__init__."""
    positions = jnp.arange(max_len, dtype=jnp.float32)[:, None]
    freqs = jnp.exp(jnp.arange(0, embedding_size, 2, dtype=jnp.float32)
                    * (-math.log(10000.0) / embedding_size))[None, :]
    args = positions * freqs
    pe = jnp.zeros((max_len, embedding_size), jnp.float32)
    pe = pe.at[:, 0::2].set(jnp.sin(args))
    pe = pe.at[:, 1::2].set(jnp.cos(args))
    return pe


# ------------------------------------ main ------------------------------------
if __name__ == "__main__":
    MAX_LEN, EMBED, PROB = 16, 32, 0.1
    BATCH, SEQ = 2, 8

    key = jax.random.PRNGKey(0)
    k_x, _ = jax.random.split(key)
    x = jax.random.normal(k_x, (BATCH, SEQ, EMBED), jnp.float32)
    pos = make_positional_features(MAX_LEN, EMBED)

    # Eval-mode forward (nn.Dropout in eval is identity); training-mode dropout
    # is available via training=True (pltpu PRNG path above).
    fwd = jax.jit(functools.partial(positional_encoding_forward,
                                    p=PROB, training=False))
    out = fwd(x, pos)
    jax.block_until_ready(out)

    # Pure-JAX reference check.
    ref = x + pos[None, :SEQ, :]
    assert out.shape == (BATCH, SEQ, EMBED)
    assert bool(jnp.all(jnp.isfinite(out)))
    assert bool(jnp.allclose(out, ref, atol=1e-6, rtol=1e-6))
    print("KERNEL_OK")
</pallas_src>

<mosaic_0001>
module attributes {stable_mosaic.version = 11 : i64} {
  func.func @_pe_eval_kernel(%arg0: i32, %arg1: memref<2x256xf32, #tpu.memory_space<vmem>>, %arg2: memref<1x256xf32, #tpu.memory_space<vmem>>, %arg3: memref<2x256xf32, #tpu.memory_space<vmem>>) attributes {dimension_semantics = [#tpu.dimension_semantics<parallel>], iteration_bounds = array<i64: 1>, scalar_prefetch = 0 : i64, scratch_operands = 0 : i64, tpu.core_type = #tpu.core_type<tc>, window_params = [{transform_indices = @transform_0, window_bounds = array<i64: 2, 256>}, {pipeline_mode = #tpu.pipeline_mode<synchronous>, transform_indices = @transform_1, window_bounds = array<i64: 1, 256>}, {transform_indices = @transform_2, window_bounds = array<i64: 2, 256>}]} {
    %c0 = arith.constant 0 : index
    %c0_0 = arith.constant 0 : index
    %0 = vector.load %arg1[%c0, %c0_0] : memref<2x256xf32, #tpu.memory_space<vmem>>, vector<2x256xf32>
    %c0_1 = arith.constant 0 : index
    %c0_2 = arith.constant 0 : index
    %1 = vector.load %arg2[%c0_1, %c0_2] : memref<1x256xf32, #tpu.memory_space<vmem>>, vector<1x256xf32>
    %2 = vector.broadcast %1 : vector<1x256xf32> to vector<2x256xf32>
    %3 = arith.addf %0, %2 : vector<2x256xf32>
    %c0_3 = arith.constant 0 : index
    %c0_4 = arith.constant 0 : index
    %4 = vector.load %arg3[%c0_3, %c0_4] : memref<2x256xf32, #tpu.memory_space<vmem>>, vector<2x256xf32>
    tpu.vector_store %arg3[%c0_3, %c0_4], %3 {strides = array<i32>} : memref<2x256xf32, #tpu.memory_space<vmem>>, vector<2x256xf32>,
    return
  }
  func.func @transform_0(%arg0: i32) -> (i32, i32) {
    %c0_i32 = arith.constant 0 : i32
    %c0_i32_0 = arith.constant 0 : i32
    return %arg0, %c0_i32 : i32, i32
  }
  func.func @transform_1(%arg0: i32) -> (i32, i32) {
    %c0_i32 = arith.constant 0 : i32
    %c0_i32_0 = arith.constant 0 : i32
    %c0_i32_1 = arith.constant 0 : i32
    return %c0_i32, %c0_i32_0 : i32, i32
  }
  func.func @transform_2(%arg0: i32) -> (i32, i32) {
    %c0_i32 = arith.constant 0 : i32
    %c0_i32_0 = arith.constant 0 : i32
    return %arg0, %c0_i32 : i32, i32
  }
}

</mosaic_0001>

<bundles_post_ra>
// kernel: positional_encoding_forward.1
= control target key start
LH: loop header
LB: loop body
LE: loop exit
PB: predicated region body
PF: predicated region fallthrough
CT: control target
= control target key end

     0   :  { %v14_v0 = vlaneseq  ;;  %v38_v1 = vmov 1983009808   ;;  %s63_s1 = inlined_call_operand.vmem [shape: f32[1,256], index: 1, kind: input, shape index: {}]   ;;  %s64_s0 = inlined_call_operand.vmem [shape: f32[2,256], index: 0, kind: input, shape index: {}]   ;;  %s65_s2 = inlined_call_operand.vmem [shape: f32[2,256], index: 2, kind: output, shape index: {}]  }
   0x1   :  { %v24_v2 = vunpack.c.l.s4 %v38_v1  ;;  %v12_v4 = vld [vmem:[%s63_s1] sm:$0x3] }
   0x2   :  { %v15_v3 = vshrl.u32 %v14_v0, 7  ;;  %v11_v12 = vld [vmem:[%s64_s0] sm:$0xf] }
   0x3   :  { %v25_v5 = vunpack.c.0.s8 %v24_v2 }
   0x4   :  { %v16_v6 = vsub.s32 0, %v15_v3  ;;  %v20_v7 = vsub.s32 1, %v15_v3 }
   0x5   :  { %v28_v10 = vsub.s32 %v25_v5, %v15_v3 }
   0x6   :  { %v17_v8 = vrot.slane %v12_v4, %v16_v6  ;;  %v21_v9 = vrot.slane %v12_v4, %v20_v7 }
   0x8   :  { %v22_v11 = vcombine.low %v17_v8, %v21_v9 }
   0xa   :  { %v29_v13 = vrot.slane %v22_v11, %v28_v10 }
   0xc   :  { %v31_v14 = vadd.f32 %v29_v13, %v11_v12 }
   0xe   :  { %32 = vst [vmem:[%s65_s2] sm:$0xf] %v31_v14 }

</bundles_post_ra>
